<compile_context>
chip_gen: v5e
topology: v5e:2x2
jax: 0.10.0
libtpu: 0.0.40
codegen_flags: <defaults>
</compile_context>

<pallas_src>
from functools import partial

import jax
import jax.numpy as jnp
from jax.experimental import pallas as pl
from jax.experimental.pallas import tpu as pltpu

_LANES = 128


def _swish_kernel(x_ref, o_ref, *, compute_dtype):
    xc = x_ref[...].astype(compute_dtype)
    half = jnp.asarray(0.5, compute_dtype)
    one = jnp.asarray(1.0, compute_dtype)
    # swish(x) = x * sigmoid(x) = 0.5 * x * (1 + tanh(0.5 * x)); tanh -> EUP.
    y = half * xc * (one + jnp.tanh(half * xc))
    o_ref[...] = y.astype(o_ref.dtype)


def _detect_generation():
    """Best-effort TPU generation (5/6/7) from device_kind; None if unknown."""
    try:
        kind = jax.devices()[0].device_kind.lower()
    except Exception:
        return None
    for gen in (7, 6, 5, 4):
        if f"v{gen}" in kind:
            return gen
    return None


def _sublane_multiple(itemsize: int) -> int:
    if itemsize >= 4:
        return 8
    if itemsize == 2:
        return 16
    return 32


def swish(x: jax.Array) -> jax.Array:
    orig_shape = x.shape
    orig_dtype = x.dtype
    n = x.size
    itemsize = jnp.dtype(orig_dtype).itemsize

    gen = _detect_generation()

    # --- Per-generation block sizing / VMEM budget (streaming op => big blocks).
    if gen == 7:
        target_block_bytes = 8 * 1024 * 1024
        vmem_limit = 48 << 20          # physical 64 MiB/TC -> leaves headroom
    elif gen == 6:
        target_block_bytes = 8 * 1024 * 1024
        vmem_limit = 48 << 20          # physical 128 MiB
    elif gen == 5:
        target_block_bytes = 3 * 1024 * 1024
        vmem_limit = None              # 4 x 3 MiB fits the 16 MiB scoped default
    else:
        target_block_bytes = 4 * 1024 * 1024
        vmem_limit = 32 << 20          # conservative, safe on all known chips

    # --- Compute dtype: bf16-native on v6e/v7x, f32 otherwise (v5e has no bf16
    #     VPU/EUP; unknown generation stays on the safe f32 path).
    if orig_dtype == jnp.bfloat16 and gen in (6, 7):
        compute_dtype = jnp.bfloat16
    else:
        compute_dtype = jnp.float32

    # --- Flatten to lane-dense (rows, 128); pad only to a lane multiple
    #     (a no-op for the common NCHW case where numel % 128 == 0).
    x_flat = jnp.reshape(x, (-1,))
    rem = n % _LANES
    n_lanes = n if rem == 0 else n + (_LANES - rem)
    if n_lanes != n:
        x_flat = jnp.pad(x_flat, (0, n_lanes - n))
    rows = n_lanes // _LANES
    x2d = x_flat.reshape(rows, _LANES)

    # --- Tile rows: dtype-aware block bytes, rounded to the native sublane
    #     multiple for this dtype.
    sub = _sublane_multiple(itemsize)
    tile_rows = max(sub, target_block_bytes // (_LANES * itemsize))
    tile_rows = (tile_rows // sub) * sub

    if tile_rows >= rows:
        # Single block with the full array extent (always a legal block shape).
        tile_rows = rows
    # v7x has 2 TensorCores: keep at least 2 blocks when the array is big
    # enough, so the parallel grid axis shards across both cores.
    if gen == 7 and rows >= 2 * sub and rows <= tile_rows:
        tile_rows = ((rows + 1) // 2 + sub - 1) // sub * sub
        tile_rows = min(tile_rows, rows)

    grid = (pl.cdiv(rows, tile_rows),)

    cost = pl.CostEstimate(
        flops=4 * n,
        transcendentals=n,
        bytes_accessed=2 * n * itemsize,
    )

    compiler_kwargs = dict(dimension_semantics=("parallel",))
    if vmem_limit is not None:
        compiler_kwargs["vmem_limit_bytes"] = vmem_limit

    out2d = pl.pallas_call(
        partial(_swish_kernel, compute_dtype=compute_dtype),
        out_shape=jax.ShapeDtypeStruct((rows, _LANES), orig_dtype),
        grid_spec=pltpu.PrefetchScalarGridSpec(
            num_scalar_prefetch=0,
            grid=grid,
            in_specs=[pl.BlockSpec((tile_rows, _LANES), lambda i: (i, 0))],
            out_specs=pl.BlockSpec((tile_rows, _LANES), lambda i: (i, 0)),
        ),
        compiler_params=pltpu.CompilerParams(**compiler_kwargs),
        cost_estimate=cost,
    )(x2d)

    out_flat = out2d.reshape(-1)
    if n_lanes != n:
        out_flat = out_flat[:n]
    return out_flat.reshape(orig_shape)


if __name__ == "__main__":
    key = jax.random.PRNGKey(0)
    x = jax.random.normal(key, (2, 4, 16, 16), dtype=jnp.float32)  # NCHW-like

    y = swish(x)
    y = jax.block_until_ready(y)

    # Reference check against plain JAX.
    y_ref = x * jax.nn.sigmoid(x)
    assert y.shape == x.shape and y.dtype == x.dtype
    assert jnp.allclose(y, y_ref, atol=1e-5, rtol=1e-5)

    print("KERNEL_OK")
</pallas_src>

<mosaic_0001>
module attributes {stable_mosaic.version = 11 : i64} {
  func.func @_swish_kernel(%arg0: i32, %arg1: memref<16x128xf32, #tpu.memory_space<vmem>>, %arg2: memref<16x128xf32, #tpu.memory_space<vmem>>) attributes {dimension_semantics = [#tpu.dimension_semantics<parallel>], iteration_bounds = array<i64: 1>, scalar_prefetch = 0 : i64, scratch_operands = 0 : i64, tpu.core_type = #tpu.core_type<tc>, window_params = [{transform_indices = @transform_0, window_bounds = array<i64: 16, 128>}, {transform_indices = @transform_1, window_bounds = array<i64: 16, 128>}]} {
    %c0 = arith.constant 0 : index
    %c0_0 = arith.constant 0 : index
    %0 = vector.load %arg1[%c0, %c0_0] : memref<16x128xf32, #tpu.memory_space<vmem>>, vector<16x128xf32>
    %cst = arith.constant 5.000000e-01 : f32
    %1 = vector.broadcast %cst : f32 to vector<16x128xf32>
    %2 = arith.mulf %1, %0 : vector<16x128xf32>
    %cst_1 = arith.constant 5.000000e-01 : f32
    %3 = vector.broadcast %cst_1 : f32 to vector<16x128xf32>
    %4 = arith.mulf %3, %0 : vector<16x128xf32>
    %5 = math.tanh %4 : vector<16x128xf32>
    %cst_2 = arith.constant 1.000000e+00 : f32
    %6 = vector.broadcast %cst_2 : f32 to vector<16x128xf32>
    %7 = arith.addf %6, %5 : vector<16x128xf32>
    %8 = arith.mulf %2, %7 : vector<16x128xf32>
    %c0_3 = arith.constant 0 : index
    %c0_4 = arith.constant 0 : index
    %9 = vector.load %arg2[%c0_3, %c0_4] : memref<16x128xf32, #tpu.memory_space<vmem>>, vector<16x128xf32>
    tpu.vector_store %arg2[%c0_3, %c0_4], %8 {strides = array<i32>} : memref<16x128xf32, #tpu.memory_space<vmem>>, vector<16x128xf32>,
    return
  }
  func.func @transform_0(%arg0: i32) -> (i32, i32) {
    %c0_i32 = arith.constant 0 : i32
    %c0_i32_0 = arith.constant 0 : i32
    return %arg0, %c0_i32 : i32, i32
  }
  func.func @transform_1(%arg0: i32) -> (i32, i32) {
    %c0_i32 = arith.constant 0 : i32
    %c0_i32_0 = arith.constant 0 : i32
    return %arg0, %c0_i32 : i32, i32
  }
}

</mosaic_0001>

<bundles_post_ra>
// kernel: tpu_custom_call.1
= control target key start
LH: loop header
LB: loop body
LE: loop exit
PB: predicated region body
PF: predicated region fallthrough
CT: control target
= control target key end

     0   :  { %6 = vsyncpa [#allocation3], 0  ;;  %s136_s0 = inlined_call_operand.hbm [shape: f32[16,128], index: 0, kind: input, shape index: {}]   ;;  %s137_s1 = inlined_call_operand.hbm [shape: f32[16,128], index: 1, kind: output, shape index: {}]  }
   0x1   :  { %7 = vsyncpa [#allocation4], 0  ;;  %s12_s8 = sshll.u32 %s136_s0, 4  ;;  %s116_s9 = smov [#allocation2]   ;;  %s13_s8 = int_to_ptr.hbm [resolvable:$true] %s12_s8 }
   0x2   :  { %s14_s10 = sshll.u32 %s116_s9, 4  ;;  %s117_s11 = smov 128   ;;  %s15_s10 = int_to_ptr.vmem [resolvable:$true] %s14_s10 }
   0x3   :  { %s118_s12 = smov 8  }
   0x4   :  { %20 = dma.hbm_to_vmem [thread:$0]  %s13_s8, 256, %s15_s10, [#allocation3], %s117_s11, %s117_s11, %s118_s12  }
   0x5   :  { %112 = dma.done.wait [#allocation3], 256  }
   0x6   :  { %113 = vsyncadd [#allocation3], 4294967040  ;;  %v25_v0 = vld [vmem:[#allocation2] sm:$0xff]  ;;  %v26_v1 = vld [vmem:[#allocation2 + $0x8] sm:$0xff]  ;;  %s119_s13 = smov [#allocation5]   ;;  %s43_s16 = sshll.u32 %s137_s1, 4  ;;  %s44_s16 = int_to_ptr.hbm [resolvable:$true] %s43_s16 }
   0x7   :  { %v27_v2 = vmul.f32 0.5, %v25_v0  ;;  %v28_v3 = vmul.f32 0.5, %v26_v1  ;;  %s41_s0 = sshll.u32 %s119_s13, 4  ;;  %s42_s0 = int_to_ptr.vmem [resolvable:$true] %s41_s0 }
   0x9   :  { %60 = vtanh.f32 %v27_v2 }
   0xa   :  { %62 = vtanh.f32 %v28_v3 }
   0xf   :  { %v61_v4 = vpop.eup %60 }
  0x10   :  { %v63_v5 = vpop.eup %62  ;;  %v31_v6 = vadd.f32 1.0, %v61_v4 }
  0x11   :  { %v32_v7 = vadd.f32 1.0, %v63_v5 }
  0x12   :  { %v33_v8 = vmul.f32 %v31_v6, %v27_v2 }
  0x13   :  { %v34_v9 = vmul.f32 %v32_v7, %v28_v3 }
  0x14   :  { %35 = vst [vmem:[#allocation5] sm:$0xff] %v33_v8 }
  0x15   :  { %36 = vst [vmem:[#allocation5 + $0x8] sm:$0xff] %v34_v9 }
  0x16   :  { %49 = dma.vmem_to_hbm [thread:$0]  %s42_s0, 256, %s44_s16, [#allocation4], %s117_s11, %s117_s11, %s118_s12  }
  0x17   :  { %114 = dma.done.wait [#allocation4], 256  }
  0x18   :  { %115 = vsyncadd [#allocation4], 4294967040 }
  0x19   :  { %54 = vsyncpa [#allocation3], 1 }
  0x1a   :  { %55 = vsyncpa [#allocation4], 1 }

</bundles_post_ra>
